<compile_context>
chip_gen: v7x
topology: tpu7x:2x2x1
jax: 0.10.0
libtpu: 0.0.40
codegen_flags: <defaults>
</compile_context>

<pallas_src>
import functools

import jax
import jax.numpy as jnp
from jax import lax
from jax.experimental import pallas as pl
from jax.experimental.pallas import tpu as pltpu

BN_EPS = 1e-5
VMEM_LIMIT = 32 * 1024 * 1024       # explicit scoped-VMEM limit (safe on v5e/v6e/v7x)
FUSE_VMEM_BUDGET = 8 * 1024 * 1024  # take the single-launch fused path below this


def _round_up(x, m):
    return (x + m - 1) // m * m


# -----------------------------------------------------------------------------
# Fused path: GEMM + stats + BatchNorm(train) + ReLU in one launch.
# Conv result y lives in a VMEM scratch for the whole grid (never touches HBM).
# -----------------------------------------------------------------------------
def _fused_conv_bn_relu_kernel(p_ref, w_ref, g_ref, be_ref, o_ref,
                               y_ref, s_ref, ss_ref, *, m_real, tm, n_tiles):
    i = pl.program_id(0)

    @pl.when(i == 0)
    def _init():
        s_ref[...] = jnp.zeros_like(s_ref)
        ss_ref[...] = jnp.zeros_like(ss_ref)

    # Conv GEMM tile: bf16 MXU operands, fp32 accumulation.  No conv bias and no
    # M-row mask: bias preceding train-mode BN cancels exactly, and the zero-padded
    # M rows then contribute exactly 0 to sum / sumsq.
    acc = jnp.dot(p_ref[...], w_ref[...], preferred_element_type=jnp.float32)
    y_ref[i] = acc

    # Per-channel partial stats as (8, Cp) vreg-aligned adds (no per-tile XLU reduce).
    part = acc.reshape(tm // 8, 8, acc.shape[-1])
    s_ref[...] += jnp.sum(part, axis=0)
    ss_ref[...] += jnp.sum(part * part, axis=0)

    @pl.when(i == n_tiles - 1)
    def _finalize():
        inv_m = jnp.float32(1.0 / m_real)
        mean = jnp.sum(s_ref[...], axis=0, keepdims=True) * inv_m        # (1, Cp)
        # NOTE: single-pass E[x^2]-E[x]^2 in fp32; fine for encoder activations,
        # revisit (Welford/Chan tile merge) if |mean| >> std at large batch sizes.
        var = jnp.sum(ss_ref[...], axis=0, keepdims=True) * inv_m - mean * mean
        scale = g_ref[...] * lax.rsqrt(var + BN_EPS)
        shift = be_ref[...] - mean * scale
        for t in range(n_tiles):          # static unroll; n_tiles is small on this path
            o_ref[t] = jnp.maximum(y_ref[t] * scale + shift, 0.0).astype(o_ref.dtype)


# -----------------------------------------------------------------------------
# Two-pass fallback (large activations).
# Pass 1: GEMM + per-tile partial stats (race-free "parallel" tiles -> v7x megacore).
# -----------------------------------------------------------------------------
def _gemm_partial_stats_kernel(p_ref, w_ref, y_ref, s_ref, ss_ref):
    acc = jnp.dot(p_ref[...], w_ref[...], preferred_element_type=jnp.float32)
    y_ref[...] = acc.astype(y_ref.dtype)                       # bf16 inter-pass tensor
    part = acc.reshape(acc.shape[0] // 8, 8, acc.shape[-1])
    s_ref[...] = jnp.sum(part, axis=0)                         # per-tile partials:
    ss_ref[...] = jnp.sum(part * part, axis=0)                 #   no shared accumulator


# Pass 2: normalize + affine + ReLU (pure HBM streaming, wide M tiles).
def _bn_relu_kernel(y_ref, sc_ref, sh_ref, o_ref):
    y = y_ref[...].astype(jnp.float32)
    o_ref[...] = jnp.maximum(y * sc_ref[...] + sh_ref[...], 0.0).astype(o_ref.dtype)


def conv_bn_relu_nhwc(x, w, gamma, beta, *, stride, pad, tm=512,
                      out_dtype=jnp.bfloat16, fuse_vmem_budget=FUSE_VMEM_BUDGET):
    """Conv2d (bias cancels under train-mode BN) + BatchNorm2d(train) + ReLU.

    x: [N,H,W,Cin] NHWC, w: OIHW.  Returns NHWC activations in `out_dtype`.
    """
    N, H, W, Cin = x.shape
    Cout, _, k, _ = w.shape
    Ho = (H + 2 * pad - k) // stride + 1
    Wo = (W + 2 * pad - k) // stride + 1
    M, K = N * Ho * Wo, k * k * Cin
    Cp = _round_up(Cout, 128)        # lane-dense output channels -> unmasked stores
    ob = jnp.dtype(out_dtype).itemsize

    # Wrapper-side im2col: bf16, TRUE (unpadded) K -> minimal HBM intermediate.
    xb = x.astype(jnp.bfloat16)
    xp = jnp.pad(xb, ((0, 0), (pad, pad), (pad, pad), (0, 0)))
    cols = []
    for i in range(k):
        for j in range(k):
            cols.append(xp[:, i:i + stride * Ho:stride, j:j + stride * Wo:stride, :])
    patches = jnp.stack(cols, axis=3).reshape(M, K)            # K ordered (kh, kw, Cin)
    wmat = w.transpose(2, 3, 1, 0).reshape(K, Cout)            # matches patch ordering
    wmat = jnp.pad(wmat, ((0, 0), (0, Cp - Cout))).astype(jnp.bfloat16)

    # Padded-channel invariant: gamma/beta columns >= Cout are zero, so padded channels
    # get scale = 0 * rsqrt(eps) = 0 and shift = 0 -> exact zeros (sliced off below).
    gam = jnp.pad(gamma, (0, Cp - Cout)).reshape(1, Cp).astype(jnp.float32)
    bet = jnp.pad(beta, (0, Cp - Cout)).reshape(1, Cp).astype(jnp.float32)

    # M tiling with an explicit VMEM budget (v7x: 64 MiB physical / 32 MiB scoped).
    TM = min(tm, _round_up(M, 8))
    while (2 * TM * K * 2 + 2 * K * Cp * 2 + 2 * TM * Cp * 2 + 4 * 8 * Cp * 4
           > VMEM_LIMIT - (4 << 20)) and TM > 8:
        TM = max(8, _round_up(TM // 2, 8))
    Mp = _round_up(M, TM)
    n_tiles = Mp // TM
    patches = jnp.pad(patches, ((0, Mp - M), (0, 0)))

    fused_bytes = (2 * TM * K * 2 + 2 * K * Cp * 2             # patch dbl-buf + weights
                   + n_tiles * TM * Cp * (4 + ob)              # y scratch fp32 + out buf
                   + 2 * 8 * Cp * 4 + 4 * Cp * 4)              # stats + gamma/beta

    if fused_bytes <= fuse_vmem_budget:
        # ---- single launch: GEMM + stats + BN + ReLU; y never leaves VMEM ----------
        out = pl.pallas_call(
            functools.partial(_fused_conv_bn_relu_kernel,
                              m_real=M, tm=TM, n_tiles=n_tiles),
            out_shape=jax.ShapeDtypeStruct((n_tiles, TM, Cp), out_dtype),
            grid=(n_tiles,),
            in_specs=[
                pl.BlockSpec((TM, K), lambda i: (i, 0)),       # patch tiles (pipelined)
                pl.BlockSpec((K, Cp), lambda i: (0, 0)),       # weights stay resident
                pl.BlockSpec((1, Cp), lambda i: (0, 0)),       # gamma
                pl.BlockSpec((1, Cp), lambda i: (0, 0)),       # beta
            ],
            out_specs=pl.BlockSpec((n_tiles, TM, Cp), lambda i: (0, 0, 0)),
            scratch_shapes=[
                pltpu.VMEM((n_tiles, TM, Cp), jnp.float32),    # resident conv result
                pltpu.VMEM((8, Cp), jnp.float32),              # sum partials
                pltpu.VMEM((8, Cp), jnp.float32),              # sumsq partials
            ],
            compiler_params=pltpu.CompilerParams(
                dimension_semantics=("arbitrary",),            # stats accumulate over M
                vmem_limit_bytes=VMEM_LIMIT),
            cost_estimate=pl.CostEstimate(
                flops=2 * Mp * K * Cp + 4 * Mp * Cp,
                transcendentals=Cp,
                bytes_accessed=Mp * K * 2 + K * Cp * 2 + Mp * Cp * ob + 4 * Cp * 4),
        )(patches, wmat, gam, bet)
    else:
        # ---- pass 1: GEMM + per-tile partial stats ("parallel" -> both TCs on v7x) --
        y, s_part, ss_part = pl.pallas_call(
            _gemm_partial_stats_kernel,
            out_shape=(
                jax.ShapeDtypeStruct((Mp, Cp), jnp.bfloat16),
                jax.ShapeDtypeStruct((n_tiles * 8, Cp), jnp.float32),
                jax.ShapeDtypeStruct((n_tiles * 8, Cp), jnp.float32),
            ),
            grid=(n_tiles,),
            in_specs=[
                pl.BlockSpec((TM, K), lambda i: (i, 0)),
                pl.BlockSpec((K, Cp), lambda i: (0, 0)),
            ],
            out_specs=(
                pl.BlockSpec((TM, Cp), lambda i: (i, 0)),
                pl.BlockSpec((8, Cp), lambda i: (i, 0)),
                pl.BlockSpec((8, Cp), lambda i: (i, 0)),
            ),
            compiler_params=pltpu.CompilerParams(
                dimension_semantics=("parallel",),
                vmem_limit_bytes=VMEM_LIMIT),
            cost_estimate=pl.CostEstimate(
                flops=2 * Mp * K * Cp, transcendentals=0,
                bytes_accessed=(Mp * K * 2 + K * Cp * 2 + Mp * Cp * 2
                                + 2 * n_tiles * 8 * Cp * 4)),
        )(patches, wmat)

        # Tiny (1, Cp) reduction + BN coefficients in plain XLA.
        inv_m = jnp.float32(1.0 / M)
        mean = jnp.sum(s_part, axis=0, keepdims=True) * inv_m
        var = jnp.sum(ss_part, axis=0, keepdims=True) * inv_m - mean * mean
        scale = gam * lax.rsqrt(var + BN_EPS)
        shift = bet - mean * scale

        # ---- pass 2: normalize + ReLU; wide M tiles (pure HBM streaming) ------------
        if Mp <= 2048:
            TM2 = Mp
        else:
            TM2 = TM
            for cand in range(2048, TM, -8):
                if Mp % cand == 0:
                    TM2 = cand
                    break
        out = pl.pallas_call(
            _bn_relu_kernel,
            out_shape=jax.ShapeDtypeStruct((Mp, Cp), out_dtype),
            grid=(Mp // TM2,),
            in_specs=[
                pl.BlockSpec((TM2, Cp), lambda i: (i, 0)),
                pl.BlockSpec((1, Cp), lambda i: (0, 0)),
                pl.BlockSpec((1, Cp), lambda i: (0, 0)),
            ],
            out_specs=pl.BlockSpec((TM2, Cp), lambda i: (i, 0)),
            compiler_params=pltpu.CompilerParams(
                dimension_semantics=("parallel",),
                vmem_limit_bytes=VMEM_LIMIT),
            cost_estimate=pl.CostEstimate(
                flops=3 * Mp * Cp, transcendentals=0,
                bytes_accessed=Mp * Cp * 2 + Mp * Cp * ob + 2 * Cp * 4),
        )(y, scale, shift)

    out = out.reshape(Mp, Cp)
    return out[:M, :Cout].reshape(N, Ho, Wo, Cout)             # stays NHWC between layers


def init_params(key):
    k1, k2, k3, k4 = jax.random.split(key, 4)
    return {
        # encoder[0]: Conv2d(3, 64, kernel_size=7, stride=2, padding=3)
        "w1": jax.random.normal(k1, (64, 3, 7, 7), jnp.float32) * 0.05,
        "b1": jax.random.normal(k2, (64,), jnp.float32) * 0.05,   # cancels under BN(train)
        # encoder[1]: BatchNorm2d(64) fresh init
        "g1": jnp.ones((64,), jnp.float32),
        "be1": jnp.zeros((64,), jnp.float32),
        # encoder[3]: Conv2d(64, 128, kernel_size=3, stride=2, padding=1)
        "w2": jax.random.normal(k3, (128, 64, 3, 3), jnp.float32) * 0.05,
        "b2": jax.random.normal(k4, (128,), jnp.float32) * 0.05,  # cancels under BN(train)
        # encoder[4]: BatchNorm2d(128) fresh init
        "g2": jnp.ones((128,), jnp.float32),
        "be2": jnp.zeros((128,), jnp.float32),
    }


def animation_generator_forward(params, x, force_two_pass=False):
    budget = 0 if force_two_pass else FUSE_VMEM_BUDGET
    h = jnp.transpose(x, (0, 2, 3, 1))                # NCHW -> NHWC once at the boundary
    # Conv bias is intentionally not applied in the kernels: bias preceding train-mode
    # BatchNorm cancels exactly (mean absorbs it, variance unchanged).
    h = conv_bn_relu_nhwc(h, params["w1"], params["g1"], params["be1"],
                          stride=2, pad=3, out_dtype=jnp.bfloat16,
                          fuse_vmem_budget=budget)
    h = conv_bn_relu_nhwc(h, params["w2"], params["g2"], params["be2"],
                          stride=2, pad=1, out_dtype=jnp.float32,
                          fuse_vmem_budget=budget)
    # TODO(synk): _build_motion_predictor() / _build_decoder() bodies are not present in
    # the reference source; treated as identity pass-through here.
    return jnp.transpose(h, (0, 3, 1, 2))             # back to NCHW at the boundary


def _reference(params, x):
    """Pure-JAX fp32 reference (lax.conv + bias + BN(train) + ReLU)."""
    def block(x, w, b, g, be, stride, pad):
        y = lax.conv_general_dilated(
            x, w, (stride, stride), [(pad, pad), (pad, pad)],
            dimension_numbers=("NCHW", "OIHW", "NCHW"))
        y = y + b[None, :, None, None]
        mean = y.mean(axis=(0, 2, 3), keepdims=True)
        var = ((y - mean) ** 2).mean(axis=(0, 2, 3), keepdims=True)
        y = (y - mean) * lax.rsqrt(var + BN_EPS)
        y = y * g[None, :, None, None] + be[None, :, None, None]
        return jnp.maximum(y, 0.0)

    f = block(x, params["w1"], params["b1"], params["g1"], params["be1"], 2, 3)
    f = block(f, params["w2"], params["b2"], params["g2"], params["be2"], 2, 1)
    return f


if __name__ == "__main__":
    key = jax.random.PRNGKey(0)
    kx, kp = jax.random.split(key)
    x = jax.random.normal(kx, (2, 3, 16, 16), jnp.float32)      # NCHW, like PyTorch
    params = init_params(kp)

    ref = jax.block_until_ready(_reference(params, x))

    # Default (fused single-launch) path.
    fwd = jax.jit(animation_generator_forward)
    out = jax.block_until_ready(fwd(params, x))
    assert out.shape == (2, 128, 4, 4), out.shape
    # bf16 MXU operands / bf16 inter-layer activations (fp32 accumulation) => loose tol.
    assert jnp.allclose(out, ref, atol=5e-2, rtol=5e-2), float(jnp.abs(out - ref).max())

    # Also exercise the tiled two-pass fallback (used for large activations).
    fwd2 = jax.jit(functools.partial(animation_generator_forward, force_two_pass=True))
    out2 = jax.block_until_ready(fwd2(params, x))
    assert jnp.allclose(out2, ref, atol=5e-2, rtol=5e-2), float(jnp.abs(out2 - ref).max())

    print("KERNEL_OK")
</pallas_src>

<mosaic_0001>
module attributes {stable_mosaic.version = 11 : i64} {
  func.func @_fused_conv_bn_relu_kernel(%arg0: i32, %arg1: memref<128x147xbf16, #tpu.memory_space<vmem>>, %arg2: memref<147x128xbf16, #tpu.memory_space<vmem>>, %arg3: memref<1x128xf32, #tpu.memory_space<vmem>>, %arg4: memref<1x128xf32, #tpu.memory_space<vmem>>, %arg5: memref<1x128x128xbf16, #tpu.memory_space<vmem>>, %arg6: memref<1x128x128xf32, #tpu.memory_space<vmem>>, %arg7: memref<8x128xf32, #tpu.memory_space<vmem>>, %arg8: memref<8x128xf32, #tpu.memory_space<vmem>>) attributes {dimension_semantics = [#tpu.dimension_semantics<arbitrary>], iteration_bounds = array<i64: 1>, scalar_prefetch = 0 : i64, scratch_operands = 3 : i64, tpu.core_type = #tpu.core_type<tc>, window_params = [{transform_indices = @transform_0, window_bounds = array<i64: 128, 147>}, {pipeline_mode = #tpu.pipeline_mode<synchronous>, transform_indices = @transform_1, window_bounds = array<i64: 147, 128>}, {pipeline_mode = #tpu.pipeline_mode<synchronous>, transform_indices = @transform_2, window_bounds = array<i64: 1, 128>}, {pipeline_mode = #tpu.pipeline_mode<synchronous>, transform_indices = @transform_3, window_bounds = array<i64: 1, 128>}, {pipeline_mode = #tpu.pipeline_mode<synchronous>, transform_indices = @transform_4, window_bounds = array<i64: 1, 128, 128>}]} {
    %c0_i32 = arith.constant 0 : i32
    %0 = arith.cmpi eq, %arg0, %c0_i32 : i32
    %1 = arith.extui %0 : i1 to i32
    %c0_i32_0 = arith.constant 0 : i32
    %2 = arith.cmpi ne, %1, %c0_i32_0 : i32
    scf.if %2 {
      %cst_18 = arith.constant 0.000000e+00 : f32
      %23 = vector.broadcast %cst_18 : f32 to vector<8x128xf32>
      %c0_19 = arith.constant 0 : index
      %c0_20 = arith.constant 0 : index
      %24 = vector.load %arg7[%c0_19, %c0_20] : memref<8x128xf32, #tpu.memory_space<vmem>>, vector<8x128xf32>
      tpu.vector_store %arg7[%c0_19, %c0_20], %23 {strides = array<i32>} : memref<8x128xf32, #tpu.memory_space<vmem>>, vector<8x128xf32>,
      %cst_21 = arith.constant 0.000000e+00 : f32
      %25 = vector.broadcast %cst_21 : f32 to vector<8x128xf32>
      %c0_22 = arith.constant 0 : index
      %c0_23 = arith.constant 0 : index
      %26 = vector.load %arg8[%c0_22, %c0_23] : memref<8x128xf32, #tpu.memory_space<vmem>>, vector<8x128xf32>
      tpu.vector_store %arg8[%c0_22, %c0_23], %25 {strides = array<i32>} : memref<8x128xf32, #tpu.memory_space<vmem>>, vector<8x128xf32>,
    } else {
    }
    %c0 = arith.constant 0 : index
    %c0_1 = arith.constant 0 : index
    %3 = vector.load %arg1[%c0, %c0_1] : memref<128x147xbf16, #tpu.memory_space<vmem>>, vector<128x147xbf16>
    %c0_2 = arith.constant 0 : index
    %c0_3 = arith.constant 0 : index
    %4 = vector.load %arg2[%c0_2, %c0_3] : memref<147x128xbf16, #tpu.memory_space<vmem>>, vector<147x128xbf16>
    %cst = arith.constant dense<0.000000e+00> : vector<128x128xf32>
    %5 = tpu.matmul %3, %4, %cst {dimension_numbers = #tpu.dot_dimension_numbers<[1], [0], [0], [1], [0, 0, 1, 1], [], []>} : vector<128x147xbf16>, vector<147x128xbf16>, vector<128x128xf32> -> vector<128x128xf32>
    %6 = arith.index_cast %arg0 : i32 to index
    %c0_4 = arith.constant 0 : index
    %c0_5 = arith.constant 0 : index
    %7 = vector.load %arg6[%6, %c0_4, %c0_5] : memref<1x128x128xf32, #tpu.memory_space<vmem>>, vector<1x128x128xf32>
    %8 = vector.shape_cast %7 : vector<1x128x128xf32> to vector<128x128xf32>
    %9 = vector.shape_cast %5 : vector<128x128xf32> to vector<1x128x128xf32>
    tpu.vector_store %arg6[%6, %c0_4, %c0_5], %9 {strides = array<i32>} : memref<1x128x128xf32, #tpu.memory_space<vmem>>, vector<1x128x128xf32>,
    %10 = vector.shape_cast %5 : vector<128x128xf32> to vector<16x8x128xf32>
    %c0_6 = arith.constant 0 : index
    %c0_7 = arith.constant 0 : index
    %11 = vector.load %arg7[%c0_6, %c0_7] : memref<8x128xf32, #tpu.memory_space<vmem>>, vector<8x128xf32>
    %cst_8 = arith.constant dense<0.000000e+00> : vector<8x128xf32>
    %12 = vector.multi_reduction <add>, %10, %cst_8 [0] : vector<16x8x128xf32> to vector<8x128xf32>
    %13 = arith.addf %11, %12 : vector<8x128xf32>
    %c0_9 = arith.constant 0 : index
    %c0_10 = arith.constant 0 : index
    %14 = vector.load %arg7[%c0_9, %c0_10] : memref<8x128xf32, #tpu.memory_space<vmem>>, vector<8x128xf32>
    tpu.vector_store %arg7[%c0_9, %c0_10], %13 {strides = array<i32>} : memref<8x128xf32, #tpu.memory_space<vmem>>, vector<8x128xf32>,
    %c0_11 = arith.constant 0 : index
    %c0_12 = arith.constant 0 : index
    %15 = vector.load %arg8[%c0_11, %c0_12] : memref<8x128xf32, #tpu.memory_space<vmem>>, vector<8x128xf32>
    %16 = arith.mulf %10, %10 : vector<16x8x128xf32>
    %cst_13 = arith.constant dense<0.000000e+00> : vector<8x128xf32>
    %17 = vector.multi_reduction <add>, %16, %cst_13 [0] : vector<16x8x128xf32> to vector<8x128xf32>
    %18 = arith.addf %15, %17 : vector<8x128xf32>
    %c0_14 = arith.constant 0 : index
    %c0_15 = arith.constant 0 : index
    %19 = vector.load %arg8[%c0_14, %c0_15] : memref<8x128xf32, #tpu.memory_space<vmem>>, vector<8x128xf32>
    tpu.vector_store %arg8[%c0_14, %c0_15], %18 {strides = array<i32>} : memref<8x128xf32, #tpu.memory_space<vmem>>, vector<8x128xf32>,
    %c0_i32_16 = arith.constant 0 : i32
    %20 = arith.cmpi eq, %arg0, %c0_i32_16 : i32
    %21 = arith.extui %20 : i1 to i32
    %c0_i32_17 = arith.constant 0 : i32
    %22 = arith.cmpi ne, %21, %c0_i32_17 : i32
    scf.if %22 {
      %c0_18 = arith.constant 0 : index
      %c0_19 = arith.constant 0 : index
      %23 = vector.load %arg7[%c0_18, %c0_19] : memref<8x128xf32, #tpu.memory_space<vmem>>, vector<8x128xf32>
      %cst_20 = arith.constant dense<0.000000e+00> : vector<128xf32>
      %24 = vector.multi_reduction <add>, %23, %cst_20 [0] : vector<8x128xf32> to vector<128xf32>
      %25 = vector.shape_cast %24 : vector<128xf32> to vector<1x128xf32>
      %cst_21 = arith.constant 7.812500e-03 : f32
      %26 = vector.broadcast %cst_21 : f32 to vector<1x128xf32>
      %27 = arith.mulf %25, %26 : vector<1x128xf32>
      %c0_22 = arith.constant 0 : index
      %c0_23 = arith.constant 0 : index
      %28 = vector.load %arg8[%c0_22, %c0_23] : memref<8x128xf32, #tpu.memory_space<vmem>>, vector<8x128xf32>
      %cst_24 = arith.constant dense<0.000000e+00> : vector<128xf32>
      %29 = vector.multi_reduction <add>, %28, %cst_24 [0] : vector<8x128xf32> to vector<128xf32>
      %30 = vector.shape_cast %29 : vector<128xf32> to vector<1x128xf32>
      %cst_25 = arith.constant 7.812500e-03 : f32
      %31 = vector.broadcast %cst_25 : f32 to vector<1x128xf32>
      %32 = arith.mulf %30, %31 : vector<1x128xf32>
      %33 = arith.mulf %27, %27 : vector<1x128xf32>
      %34 = arith.subf %32, %33 : vector<1x128xf32>
      %c0_26 = arith.constant 0 : index
      %c0_27 = arith.constant 0 : index
      %35 = vector.load %arg3[%c0_26, %c0_27] : memref<1x128xf32, #tpu.memory_space<vmem>>, vector<1x128xf32>
      %cst_28 = arith.constant 9.99999974E-6 : f32
      %36 = vector.broadcast %cst_28 : f32 to vector<1x128xf32>
      %37 = arith.addf %34, %36 : vector<1x128xf32>
      %38 = math.rsqrt %37 : vector<1x128xf32>
      %39 = arith.mulf %35, %38 : vector<1x128xf32>
      %c0_29 = arith.constant 0 : index
      %c0_30 = arith.constant 0 : index
      %40 = vector.load %arg4[%c0_29, %c0_30] : memref<1x128xf32, #tpu.memory_space<vmem>>, vector<1x128xf32>
      %41 = arith.mulf %27, %39 : vector<1x128xf32>
      %42 = arith.subf %40, %41 : vector<1x128xf32>
      %c0_31 = arith.constant 0 : index
      %c0_32 = arith.constant 0 : index
      %c0_33 = arith.constant 0 : index
      %43 = vector.load %arg6[%c0_31, %c0_32, %c0_33] : memref<1x128x128xf32, #tpu.memory_space<vmem>>, vector<1x128x128xf32>
      %44 = vector.shape_cast %43 : vector<1x128x128xf32> to vector<128x128xf32>
      %45 = vector.broadcast %39 : vector<1x128xf32> to vector<128x128xf32>
      %46 = arith.mulf %44, %45 : vector<128x128xf32>
      %47 = vector.broadcast %42 : vector<1x128xf32> to vector<128x128xf32>
      %48 = arith.addf %46, %47 : vector<128x128xf32>
      %cst_34 = arith.constant 0.000000e+00 : f32
      %49 = vector.broadcast %cst_34 : f32 to vector<128x128xf32>
      %50 = arith.maximumf %48, %49 : vector<128x128xf32>
      %51 = arith.truncf %50 : vector<128x128xf32> to vector<128x128xbf16>
      %c0_35 = arith.constant 0 : index
      %c0_36 = arith.constant 0 : index
      %c0_37 = arith.constant 0 : index
      %52 = vector.load %arg5[%c0_35, %c0_36, %c0_37] : memref<1x128x128xbf16, #tpu.memory_space<vmem>>, vector<1x128x128xbf16>
      %53 = vector.shape_cast %52 : vector<1x128x128xbf16> to vector<128x128xbf16>
      %54 = vector.shape_cast %51 : vector<128x128xbf16> to vector<1x128x128xbf16>
      tpu.vector_store %arg5[%c0_35, %c0_36, %c0_37], %54 {strides = array<i32>} : memref<1x128x128xbf16, #tpu.memory_space<vmem>>, vector<1x128x128xbf16>,
    } else {
    }
    return
  }
  func.func @transform_0(%arg0: i32) -> (i32, i32) {
    %c0_i32 = arith.constant 0 : i32
    %c0_i32_0 = arith.constant 0 : i32
    return %arg0, %c0_i32 : i32, i32
  }
  func.func @transform_1(%arg0: i32) -> (i32, i32) {
    %c0_i32 = arith.constant 0 : i32
    %c0_i32_0 = arith.constant 0 : i32
    %c0_i32_1 = arith.constant 0 : i32
    return %c0_i32, %c0_i32_0 : i32, i32
  }
  func.func @transform_2(%arg0: i32) -> (i32, i32) {
    %c0_i32 = arith.constant 0 : i32
    %c0_i32_0 = arith.constant 0 : i32
    %c0_i32_1 = arith.constant 0 : i32
    return %c0_i32, %c0_i32_0 : i32, i32
  }
  func.func @transform_3(%arg0: i32) -> (i32, i32) {
    %c0_i32 = arith.constant 0 : i32
    %c0_i32_0 = arith.constant 0 : i32
    %c0_i32_1 = arith.constant 0 : i32
    return %c0_i32, %c0_i32_0 : i32, i32
  }
  func.func @transform_4(%arg0: i32) -> (i32, i32, i32) {
    %c0_i32 = arith.constant 0 : i32
    %c0_i32_0 = arith.constant 0 : i32
    %c0_i32_1 = arith.constant 0 : i32
    %c0_i32_2 = arith.constant 0 : i32
    return %c0_i32, %c0_i32_0, %c0_i32_1 : i32, i32, i32
  }
}

module attributes {stable_mosaic.version = 11 : i64} {
  func.func @_fused_conv_bn_relu_kernel(%arg0: i32, %arg1: memref<32x576xbf16, #tpu.memory_space<vmem>>, %arg2: memref<576x128xbf16, #tpu.memory_space<vmem>>, %arg3: memref<1x128xf32, #tpu.memory_space<vmem>>, %arg4: memref<1x128xf32, #tpu.memory_space<vmem>>, %arg5: memref<1x32x128xf32, #tpu.memory_space<vmem>>, %arg6: memref<1x32x128xf32, #tpu.memory_space<vmem>>, %arg7: memref<8x128xf32, #tpu.memory_space<vmem>>, %arg8: memref<8x128xf32, #tpu.memory_space<vmem>>) attributes {dimension_semantics = [#tpu.dimension_semantics<arbitrary>], iteration_bounds = array<i64: 1>, scalar_prefetch = 0 : i64, scratch_operands = 3 : i64, tpu.core_type = #tpu.core_type<tc>, window_params = [{transform_indices = @transform_0, window_bounds = array<i64: 32, 576>}, {pipeline_mode = #tpu.pipeline_mode<synchronous>, transform_indices = @transform_1, window_bounds = array<i64: 576, 128>}, {pipeline_mode = #tpu.pipeline_mode<synchronous>, transform_indices = @transform_2, window_bounds = array<i64: 1, 128>}, {pipeline_mode = #tpu.pipeline_mode<synchronous>, transform_indices = @transform_3, window_bounds = array<i64: 1, 128>}, {pipeline_mode = #tpu.pipeline_mode<synchronous>, transform_indices = @transform_4, window_bounds = array<i64: 1, 32, 128>}]} {
    %c0_i32 = arith.constant 0 : i32
    %0 = arith.cmpi eq, %arg0, %c0_i32 : i32
    %1 = arith.extui %0 : i1 to i32
    %c0_i32_0 = arith.constant 0 : i32
    %2 = arith.cmpi ne, %1, %c0_i32_0 : i32
    scf.if %2 {
      %cst_18 = arith.constant 0.000000e+00 : f32
      %23 = vector.broadcast %cst_18 : f32 to vector<8x128xf32>
      %c0_19 = arith.constant 0 : index
      %c0_20 = arith.constant 0 : index
      %24 = vector.load %arg7[%c0_19, %c0_20] : memref<8x128xf32, #tpu.memory_space<vmem>>, vector<8x128xf32>
      tpu.vector_store %arg7[%c0_19, %c0_20], %23 {strides = array<i32>} : memref<8x128xf32, #tpu.memory_space<vmem>>, vector<8x128xf32>,
      %cst_21 = arith.constant 0.000000e+00 : f32
      %25 = vector.broadcast %cst_21 : f32 to vector<8x128xf32>
      %c0_22 = arith.constant 0 : index
      %c0_23 = arith.constant 0 : index
      %26 = vector.load %arg8[%c0_22, %c0_23] : memref<8x128xf32, #tpu.memory_space<vmem>>, vector<8x128xf32>
      tpu.vector_store %arg8[%c0_22, %c0_23], %25 {strides = array<i32>} : memref<8x128xf32, #tpu.memory_space<vmem>>, vector<8x128xf32>,
    } else {
    }
    %c0 = arith.constant 0 : index
    %c0_1 = arith.constant 0 : index
    %3 = vector.load %arg1[%c0, %c0_1] : memref<32x576xbf16, #tpu.memory_space<vmem>>, vector<32x576xbf16>
    %c0_2 = arith.constant 0 : index
    %c0_3 = arith.constant 0 : index
    %4 = vector.load %arg2[%c0_2, %c0_3] : memref<576x128xbf16, #tpu.memory_space<vmem>>, vector<576x128xbf16>
    %cst = arith.constant dense<0.000000e+00> : vector<32x128xf32>
    %5 = tpu.matmul %3, %4, %cst {dimension_numbers = #tpu.dot_dimension_numbers<[1], [0], [0], [1], [0, 0, 1, 1], [], []>} : vector<32x576xbf16>, vector<576x128xbf16>, vector<32x128xf32> -> vector<32x128xf32>
    %6 = arith.index_cast %arg0 : i32 to index
    %c0_4 = arith.constant 0 : index
    %c0_5 = arith.constant 0 : index
    %7 = vector.load %arg6[%6, %c0_4, %c0_5] : memref<1x32x128xf32, #tpu.memory_space<vmem>>, vector<1x32x128xf32>
    %8 = vector.shape_cast %7 : vector<1x32x128xf32> to vector<32x128xf32>
    %9 = vector.shape_cast %5 : vector<32x128xf32> to vector<1x32x128xf32>
    tpu.vector_store %arg6[%6, %c0_4, %c0_5], %9 {strides = array<i32>} : memref<1x32x128xf32, #tpu.memory_space<vmem>>, vector<1x32x128xf32>,
    %10 = vector.shape_cast %5 : vector<32x128xf32> to vector<4x8x128xf32>
    %c0_6 = arith.constant 0 : index
    %c0_7 = arith.constant 0 : index
    %11 = vector.load %arg7[%c0_6, %c0_7] : memref<8x128xf32, #tpu.memory_space<vmem>>, vector<8x128xf32>
    %cst_8 = arith.constant dense<0.000000e+00> : vector<8x128xf32>
    %12 = vector.multi_reduction <add>, %10, %cst_8 [0] : vector<4x8x128xf32> to vector<8x128xf32>
    %13 = arith.addf %11, %12 : vector<8x128xf32>
    %c0_9 = arith.constant 0 : index
    %c0_10 = arith.constant 0 : index
    %14 = vector.load %arg7[%c0_9, %c0_10] : memref<8x128xf32, #tpu.memory_space<vmem>>, vector<8x128xf32>
    tpu.vector_store %arg7[%c0_9, %c0_10], %13 {strides = array<i32>} : memref<8x128xf32, #tpu.memory_space<vmem>>, vector<8x128xf32>,
    %c0_11 = arith.constant 0 : index
    %c0_12 = arith.constant 0 : index
    %15 = vector.load %arg8[%c0_11, %c0_12] : memref<8x128xf32, #tpu.memory_space<vmem>>, vector<8x128xf32>
    %16 = arith.mulf %10, %10 : vector<4x8x128xf32>
    %cst_13 = arith.constant dense<0.000000e+00> : vector<8x128xf32>
    %17 = vector.multi_reduction <add>, %16, %cst_13 [0] : vector<4x8x128xf32> to vector<8x128xf32>
    %18 = arith.addf %15, %17 : vector<8x128xf32>
    %c0_14 = arith.constant 0 : index
    %c0_15 = arith.constant 0 : index
    %19 = vector.load %arg8[%c0_14, %c0_15] : memref<8x128xf32, #tpu.memory_space<vmem>>, vector<8x128xf32>
    tpu.vector_store %arg8[%c0_14, %c0_15], %18 {strides = array<i32>} : memref<8x128xf32, #tpu.memory_space<vmem>>, vector<8x128xf32>,
    %c0_i32_16 = arith.constant 0 : i32
    %20 = arith.cmpi eq, %arg0, %c0_i32_16 : i32
    %21 = arith.extui %20 : i1 to i32
    %c0_i32_17 = arith.constant 0 : i32
    %22 = arith.cmpi ne, %21, %c0_i32_17 : i32
    scf.if %22 {
      %c0_18 = arith.constant 0 : index
      %c0_19 = arith.constant 0 : index
      %23 = vector.load %arg7[%c0_18, %c0_19] : memref<8x128xf32, #tpu.memory_space<vmem>>, vector<8x128xf32>
      %cst_20 = arith.constant dense<0.000000e+00> : vector<128xf32>
      %24 = vector.multi_reduction <add>, %23, %cst_20 [0] : vector<8x128xf32> to vector<128xf32>
      %25 = vector.shape_cast %24 : vector<128xf32> to vector<1x128xf32>
      %cst_21 = arith.constant 3.125000e-02 : f32
      %26 = vector.broadcast %cst_21 : f32 to vector<1x128xf32>
      %27 = arith.mulf %25, %26 : vector<1x128xf32>
      %c0_22 = arith.constant 0 : index
      %c0_23 = arith.constant 0 : index
      %28 = vector.load %arg8[%c0_22, %c0_23] : memref<8x128xf32, #tpu.memory_space<vmem>>, vector<8x128xf32>
      %cst_24 = arith.constant dense<0.000000e+00> : vector<128xf32>
      %29 = vector.multi_reduction <add>, %28, %cst_24 [0] : vector<8x128xf32> to vector<128xf32>
      %30 = vector.shape_cast %29 : vector<128xf32> to vector<1x128xf32>
      %cst_25 = arith.constant 3.125000e-02 : f32
      %31 = vector.broadcast %cst_25 : f32 to vector<1x128xf32>
      %32 = arith.mulf %30, %31 : vector<1x128xf32>
      %33 = arith.mulf %27, %27 : vector<1x128xf32>
      %34 = arith.subf %32, %33 : vector<1x128xf32>
      %c0_26 = arith.constant 0 : index
      %c0_27 = arith.constant 0 : index
      %35 = vector.load %arg3[%c0_26, %c0_27] : memref<1x128xf32, #tpu.memory_space<vmem>>, vector<1x128xf32>
      %cst_28 = arith.constant 9.99999974E-6 : f32
      %36 = vector.broadcast %cst_28 : f32 to vector<1x128xf32>
      %37 = arith.addf %34, %36 : vector<1x128xf32>
      %38 = math.rsqrt %37 : vector<1x128xf32>
      %39 = arith.mulf %35, %38 : vector<1x128xf32>
      %c0_29 = arith.constant 0 : index
      %c0_30 = arith.constant 0 : index
      %40 = vector.load %arg4[%c0_29, %c0_30] : memref<1x128xf32, #tpu.memory_space<vmem>>, vector<1x128xf32>
      %41 = arith.mulf %27, %39 : vector<1x128xf32>
      %42 = arith.subf %40, %41 : vector<1x128xf32>
      %c0_31 = arith.constant 0 : index
      %c0_32 = arith.constant 0 : index
      %c0_33 = arith.constant 0 : index
      %43 = vector.load %arg6[%c0_31, %c0_32, %c0_33] : memref<1x32x128xf32, #tpu.memory_space<vmem>>, vector<1x32x128xf32>
      %44 = vector.shape_cast %43 : vector<1x32x128xf32> to vector<32x128xf32>
      %45 = vector.broadcast %39 : vector<1x128xf32> to vector<32x128xf32>
      %46 = arith.mulf %44, %45 : vector<32x128xf32>
      %47 = vector.broadcast %42 : vector<1x128xf32> to vector<32x128xf32>
      %48 = arith.addf %46, %47 : vector<32x128xf32>
      %cst_34 = arith.constant 0.000000e+00 : f32
      %49 = vector.broadcast %cst_34 : f32 to vector<32x128xf32>
      %50 = arith.maximumf %48, %49 : vector<32x128xf32>
      %c0_35 = arith.constant 0 : index
      %c0_36 = arith.constant 0 : index
      %c0_37 = arith.constant 0 : index
      %51 = vector.load %arg5[%c0_35, %c0_36, %c0_37] : memref<1x32x128xf32, #tpu.memory_space<vmem>>, vector<1x32x128xf32>
      %52 = vector.shape_cast %51 : vector<1x32x128xf32> to vector<32x128xf32>
      %53 = vector.shape_cast %50 : vector<32x128xf32> to vector<1x32x128xf32>
      tpu.vector_store %arg5[%c0_35, %c0_36, %c0_37], %53 {strides = array<i32>} : memref<1x32x128xf32, #tpu.memory_space<vmem>>, vector<1x32x128xf32>,
    } else {
    }
    return
  }
  func.func @transform_0(%arg0: i32) -> (i32, i32) {
    %c0_i32 = arith.constant 0 : i32
    %c0_i32_0 = arith.constant 0 : i32
    return %arg0, %c0_i32 : i32, i32
  }
  func.func @transform_1(%arg0: i32) -> (i32, i32) {
    %c0_i32 = arith.constant 0 : i32
    %c0_i32_0 = arith.constant 0 : i32
    %c0_i32_1 = arith.constant 0 : i32
    return %c0_i32, %c0_i32_0 : i32, i32
  }
  func.func @transform_2(%arg0: i32) -> (i32, i32) {
    %c0_i32 = arith.constant 0 : i32
    %c0_i32_0 = arith.constant 0 : i32
    %c0_i32_1 = arith.constant 0 : i32
    return %c0_i32, %c0_i32_0 : i32, i32
  }
  func.func @transform_3(%arg0: i32) -> (i32, i32) {
    %c0_i32 = arith.constant 0 : i32
    %c0_i32_0 = arith.constant 0 : i32
    %c0_i32_1 = arith.constant 0 : i32
    return %c0_i32, %c0_i32_0 : i32, i32
  }
  func.func @transform_4(%arg0: i32) -> (i32, i32, i32) {
    %c0_i32 = arith.constant 0 : i32
    %c0_i32_0 = arith.constant 0 : i32
    %c0_i32_1 = arith.constant 0 : i32
    %c0_i32_2 = arith.constant 0 : i32
    return %c0_i32, %c0_i32_0, %c0_i32_1 : i32, i32, i32
  }
}

</mosaic_0001>

<bundles_post_ra>
// kernel: animation_generator_forward.2
= control target key start
LH: loop header
LB: loop body
LE: loop exit
PB: predicated region body
PF: predicated region fallthrough
CT: control target
= control target key end

     0   :  { %v746_v0 = vmov 0   ;;  %vm188_vm0 = vcmask 154624   ;;  %vm213_vm1 = vcmask 1040384   ;;  %vm214_vm2 = vcmask 1041408   ;;  %s985_s1 = inlined_call_operand.vmem [shape: bf16[147,128], index: 1, kind: input, shape index: {}]   ;;  %s986_s0 = inlined_call_operand.vmem [shape: bf16[128,147], index: 0, kind: input, shape index: {}]   ;;  %s987_s2 = inlined_call_operand.vmem [shape: f32[1,128], index: 2, kind: input, shape index: {}]   ;;  %s988_s3 = inlined_call_operand.vmem [shape: f32[1,128], index: 3, kind: input, shape index: {}]   ;;  %s989_s4 = inlined_call_operand.vmem [shape: bf16[1,128,128], index: 4, kind: output, shape index: {}]  }
   0x1   :  { %220 = vmatprep.subr.bf16.mxu0 %v746_v0  ;;  %v710_v1 = vld [vmem:[%s985_s1] sm:$0xff]   ;;  %688 = vmatprep.subr.bf16.mxu1 %v746_v0  ;;  %v711_v2 = vld [vmem:[%s985_s1 + $0x8] sm:$0xff]   ;;  %v712_v3 = vld [vmem:[%s985_s1 + $0x10] sm:$0xff]   ;;  %v747_v11 = vmov 65535  }
   0x2   :  { %221 = vmatpush1.bf16.msra.mxu0 %v710_v1  ;;  %698 = vmatpush1.bf16.msra.mxu1 %v710_v1  ;;  %v713_v4 = vld [vmem:[%s985_s1 + $0x18] sm:$0xff]   ;;  %v722_v5 = vld [vmem:[%s986_s0 + $0x4] ss:$8 sps:$4 sm:$0xff]   ;;  %v716_v9 = vld [vmem:[%s985_s1 + $0x30] sm:$0xff]   ;;  %v215_v12 = vsel %vm213_vm1, 4294967295, %v747_v11 }
   0x3   :  { %222 = vmatprep.subr.bf16.mxu0 %v746_v0  ;;  %689 = vmatprep.subr.bf16.mxu1 %v746_v0  ;;  %v728_v6 = vld [vmem:[%s986_s0 + $0x44] ss:$8 sps:$4 sm:$0xff]   ;;  %v717_v10 = vld [vmem:[%s985_s1 + $0x38] sm:$0xff]   ;;  %v719_v14 = vld [vmem:[%s985_s1 + $0x48] ss:$0 sps:$4 sm:$0x33]  }
   0x4   :  { %601 = vmatprep.mubr.msk.bf16.mxu0 %vm188_vm0, %v722_v5  ;;  %v714_v7 = vld [vmem:[%s985_s1 + $0x20] sm:$0xff]   ;;  %605 = vmatprep.mubr.msk.bf16.mxu1 %vm188_vm0, %v728_v6  ;;  %v715_v8 = vld [vmem:[%s985_s1 + $0x28] sm:$0xff]   ;;  %v216_v15 = vsel %vm214_vm2, %v215_v12, 0  ;;  %v723_v19 = vld [vmem:[%s986_s0 + $0x14] ss:$8 sps:$4 sm:$0xff]  }
   0x5   :  { %v718_v13 = vld [vmem:[%s985_s1 + $0x40] sm:$0xff]   ;;  %v218_v16 = vand.u32 %v719_v14, %v216_v15  ;;  %v732_v20 = vld [vmem:[%s986_s0 + $0x54] ss:$8 sps:$4 sm:$0xff]   ;;  %v725_v21 = vld [vmem:[%s986_s0 + $0x10] ss:$8 sps:$4 sm:$0xff]  }
   0x6   :  { %223 = vmatpush1.bf16.msra.mxu0 %v711_v2  ;;  %699 = vmatpush1.bf16.msra.mxu1 %v711_v2  ;;  %v720_v17 = vld [vmem:[%s986_s0] ss:$8 sps:$4 sm:$0xff]   ;;  %v734_v22 = vld [vmem:[%s986_s0 + $0x50] ss:$8 sps:$4 sm:$0xff]   ;;  %v729_v23 = vld [vmem:[%s986_s0 + $0x24] ss:$8 sps:$4 sm:$0xff]  }
   0x7   :  { %224 = vmatprep.subr.bf16.mxu0 %v746_v0  ;;  %690 = vmatprep.subr.bf16.mxu1 %v746_v0  ;;  %v726_v18 = vld [vmem:[%s986_s0 + $0x40] ss:$8 sps:$4 sm:$0xff]   ;;  %v738_v24 = vld [vmem:[%s986_s0 + $0x64] ss:$8 sps:$4 sm:$0xff]   ;;  %v735_v27 = vld [vmem:[%s986_s0 + $0x34] ss:$8 sps:$4 sm:$0xff]  }
   0x8   :  { %v731_v25 = vld [vmem:[%s986_s0 + $0x20] ss:$8 sps:$4 sm:$0xff]   ;;  %v741_v28 = vld [vmem:[%s986_s0 + $0x74] ss:$8 sps:$4 sm:$0xff]   ;;  %v737_v29 = vld [vmem:[%s986_s0 + $0x30] ss:$8 sps:$4 sm:$0xff]  }
   0x9   :  { %v740_v26 = vld [vmem:[%s986_s0 + $0x60] ss:$8 sps:$4 sm:$0xff]   ;;  %v743_v30 = vld [vmem:[%s986_s0 + $0x70] ss:$8 sps:$4 sm:$0xff]  }
   0xa   :  { %225 = vmatpush1.bf16.msra.mxu0 %v712_v3  ;;  %700 = vmatpush1.bf16.msra.mxu1 %v712_v3 }
   0xb   :  { %226 = vmatprep.subr.bf16.mxu0 %v746_v0  ;;  %691 = vmatprep.subr.bf16.mxu1 %v746_v0 }
   0xe   :  { %227 = vmatpush1.bf16.msra.mxu0 %v713_v4  ;;  %701 = vmatpush1.bf16.msra.mxu1 %v713_v4 }
   0xf   :  { %228 = vmatprep.subr.bf16.mxu0 %v746_v0  ;;  %692 = vmatprep.subr.bf16.mxu1 %v746_v0 }
  0x12   :  { %229 = vmatpush1.bf16.msra.mxu0 %v714_v7  ;;  %702 = vmatpush1.bf16.msra.mxu1 %v714_v7 }
  0x13   :  { %230 = vmatprep.subr.bf16.mxu0 %v746_v0  ;;  %693 = vmatprep.subr.bf16.mxu1 %v746_v0 }
  0x16   :  { %231 = vmatpush1.bf16.msra.mxu0 %v715_v8  ;;  %703 = vmatpush1.bf16.msra.mxu1 %v715_v8 }
  0x17   :  { %232 = vmatprep.subr.bf16.mxu0 %v746_v0  ;;  %694 = vmatprep.subr.bf16.mxu1 %v746_v0 }
  0x1a   :  { %233 = vmatpush1.bf16.msra.mxu0 %v716_v9  ;;  %704 = vmatpush1.bf16.msra.mxu1 %v716_v9 }
  0x1b   :  { %234 = vmatprep.subr.bf16.mxu0 %v746_v0  ;;  %695 = vmatprep.subr.bf16.mxu1 %v746_v0 }
  0x1e   :  { %235 = vmatpush1.bf16.msra.mxu0 %v717_v10  ;;  %705 = vmatpush1.bf16.msra.mxu1 %v717_v10 }
  0x1f   :  { %236 = vmatprep.subr.bf16.mxu0 %v746_v0  ;;  %696 = vmatprep.subr.bf16.mxu1 %v746_v0 }
  0x22   :  { %237 = vmatpush1.bf16.msra.mxu0 %v718_v13  ;;  %706 = vmatpush1.bf16.msra.mxu1 %v718_v13 }
  0x23   :  { %238 = vmatprep.subr.bf16.mxu0 %v746_v0  ;;  %697 = vmatprep.subr.bf16.mxu1 %v746_v0 }
  0x26   :  { %239 = vmatpush1.bf16.msra.mxu0 %v218_v16  ;;  %707 = vmatpush1.bf16.msra.mxu1 %v218_v16 }
  0x29   :  { %253 = vmatmul.mubr.bf16.vlgmr.msra.gmra.mrb[0].mxu0 %v720_v17  ;;  %285 = vmatmul.mubr.bf16.vlgmr.msra.gmra.mrb[0].mxu1 %v726_v18 }
  0x2a   :  { %602 = vmatprep.mubr.msk.bf16.mxu0 %vm188_vm0, %v723_v19  ;;  %606 = vmatprep.mubr.msk.bf16.mxu1 %vm188_vm0, %v732_v20 }
  0x31   :  { %261 = vmatmul.mubr.bf16.gmra.mrb[4].mxu0 %v725_v21  ;;  %293 = vmatmul.mubr.bf16.gmra.mrb[4].mxu1 %v734_v22 }
  0x32   :  { %603 = vmatprep.mubr.msk.bf16.mxu0 %vm188_vm0, %v729_v23  ;;  %607 = vmatprep.mubr.msk.bf16.mxu1 %vm188_vm0, %v738_v24 }
  0x39   :  { %269 = vmatmul.mubr.bf16.gmra.mrb[8].mxu0 %v731_v25  ;;  %301 = vmatmul.mubr.bf16.gmra.mrb[8].mxu1 %v740_v26 }
  0x3a   :  { %604 = vmatprep.mubr.msk.bf16.mxu0 %vm188_vm0, %v735_v27  ;;  %608 = vmatprep.mubr.msk.bf16.mxu1 %vm188_vm0, %v741_v28 }
  0x41   :  { %277 = vmatmul.mubr.bf16.gmra.mrb[12].mxu0 %v737_v29  ;;  %309 = vmatmul.mubr.bf16.gmra.mrb[12].mxu1 %v743_v30 }
  0xfc   :  { %v859_v31 = vpop.f32.mrb[0].mxu0  ;;  %v861_v32 = vpop.f32.mrb[0].mxu1 }
  0xfd   :  { %v256_v33 = vpop.f32.mrb[1].mxu0  ;;  %v288_v34 = vpop.f32.mrb[1].mxu1  ;;  %v354_v37 = vmul.f32 %v859_v31, %v859_v31  ;;  %v362_v20 = vmul.f32 %v861_v32, %v861_v32 }
  0xfe   :  { %v863_v35 = vpop.f32.mrb[2].mxu0  ;;  %v865_v36 = vpop.f32.mrb[2].mxu1 }
  0xff   :  { %v336_v38 = vadd.f32 %v863_v35, %v859_v31  ;;  %v355_v39 = vmul.f32 %v863_v35, %v863_v35  ;;  %v259_v40 = vpop.f32.mrb[3].mxu0  ;;  %v291_v41 = vpop.f32.mrb[3].mxu1  ;;  %v363_v23 = vmul.f32 %v865_v36, %v865_v36 }
 0x101   :  { %v370_v42 = vadd.f32 %v355_v39, %v354_v37 }
 0x104   :  { %v873_v43 = vpop.f32.mrb[4].mxu0  ;;  %v875_v44 = vpop.f32.mrb[4].mxu1 }
 0x105   :  { %v337_v45 = vadd.f32 %v336_v38, %v873_v43  ;;  %v356_v46 = vmul.f32 %v873_v43, %v873_v43  ;;  %v264_v47 = vpop.f32.mrb[5].mxu0  ;;  %v296_v48 = vpop.f32.mrb[5].mxu1  ;;  %v364_v26 = vmul.f32 %v875_v44, %v875_v44 }
 0x106   :  { %v880_v49 = vpop.f32.mrb[6].mxu0  ;;  %v882_v50 = vpop.f32.mrb[6].mxu1 }
 0x107   :  { %v371_v51 = vadd.f32 %v370_v42, %v356_v46  ;;  %v338_v52 = vadd.f32 %v337_v45, %v880_v49  ;;  %v357_v53 = vmul.f32 %v880_v49, %v880_v49  ;;  %v267_v54 = vpop.f32.mrb[7].mxu0  ;;  %v299_v55 = vpop.f32.mrb[7].mxu1  ;;  %v365_v29 = vmul.f32 %v882_v50, %v882_v50 }
 0x109   :  { %v372_v56 = vadd.f32 %v371_v51, %v357_v53 }
 0x10c   :  { %v887_v57 = vpop.f32.mrb[8].mxu0  ;;  %v889_v58 = vpop.f32.mrb[8].mxu1 }
 0x10d   :  { %v339_v59 = vadd.f32 %v338_v52, %v887_v57  ;;  %v358_v60 = vmul.f32 %v887_v57, %v887_v57  ;;  %v272_v61 = vpop.f32.mrb[9].mxu0  ;;  %v304_v62 = vpop.f32.mrb[9].mxu1  ;;  %v366_v37 = vmul.f32 %v889_v58, %v889_v58 }
 0x10e   :  { %v894_v63 = vpop.f32.mrb[10].mxu0  ;;  %v896_v0 = vpop.f32.mrb[10].mxu1 }
 0x10f   :  { %v373_v1 = vadd.f32 %v372_v56, %v358_v60  ;;  %v340_v2 = vadd.f32 %v339_v59, %v894_v63  ;;  %v359_v3 = vmul.f32 %v894_v63, %v894_v63  ;;  %v275_v4 = vpop.f32.mrb[11].mxu0  ;;  %v307_v5 = vpop.f32.mrb[11].mxu1  ;;  %v367_v41 = vmul.f32 %v896_v0, %v896_v0 }
 0x111   :  { %v374_v6 = vadd.f32 %v373_v1, %v359_v3 }
 0x114   :  { %v901_v7 = vpop.f32.mrb[12].mxu0  ;;  %v903_v8 = vpop.f32.mrb[12].mxu1 }
 0x115   :  { %v341_v9 = vadd.f32 %v340_v2, %v901_v7  ;;  %v360_v10 = vmul.f32 %v901_v7, %v901_v7  ;;  %v280_v11 = vpop.f32.mrb[13].mxu0  ;;  %v312_v12 = vpop.f32.mrb[13].mxu1  ;;  %v368_v42 = vmul.f32 %v903_v8, %v903_v8 }
 0x116   :  { %v908_v13 = vpop.f32.mrb[14].mxu0  ;;  %v910_v14 = vpop.f32.mrb[14].mxu1  ;;  %v432_v12 = vlaneseq }
 0x117   :  { %v375_v15 = vadd.f32 %v374_v6, %v360_v10  ;;  %v342_v16 = vadd.f32 %v341_v9, %v908_v13  ;;  %v361_v17 = vmul.f32 %v908_v13, %v908_v13  ;;  %v283_v18 = vpop.f32.mrb[15].mxu0  ;;  %v315_v19 = vpop.f32.mrb[15].mxu1  ;;  %v369_v51 = vmul.f32 %v910_v14, %v910_v14 }
 0x119   :  { %v343_v21 = vadd.f32 %v342_v16, %v861_v32  ;;  %v376_v22 = vadd.f32 %v375_v15, %v361_v17  ;;  %v433_v15 = vshrl.u32 %v432_v12, 7  ;;  %v408_v16 = vld [vmem:[%s987_s2] sm:$0x1] }
 0x11b   :  { %v344_v24 = vadd.f32 %v343_v21, %v865_v36  ;;  %v377_v25 = vadd.f32 %v376_v22, %v362_v20  ;;  %v434_v17 = vsub.s32 0, %v433_v15  ;;  %v412_v20 = vld [vmem:[%s988_s3] sm:$0x1] }
 0x11d   :  { %v378_v27 = vadd.f32 %v377_v25, %v363_v23  ;;  %v345_v28 = vadd.f32 %v344_v24, %v875_v44 }
 0x11f   :  { %v346_v30 = vadd.f32 %v345_v28, %v882_v50  ;;  %v379_v33 = vadd.f32 %v378_v27, %v364_v26 }
 0x121   :  { %v347_v34 = vadd.f32 %v346_v30, %v889_v58  ;;  %v380_v38 = vadd.f32 %v379_v33, %v365_v29 }
 0x123   :  { %v381_v39 = vadd.f32 %v380_v38, %v366_v37  ;;  %v348_v40 = vadd.f32 %v347_v34, %v896_v0 }
 0x125   :  { %v382_v45 = vadd.f32 %v381_v39, %v367_v41  ;;  %v349_v46 = vadd.f32 %v348_v40, %v903_v8 }
 0x127   :  { %v383_v47 = vadd.f32 %v382_v45, %v368_v42  ;;  %v350_v48 = vadd.f32 %v349_v46, %v910_v14 }
 0x129   :  { %v384_v52 = vadd.f32 %v383_v47, %v369_v51  ;;  %v391_v53 = vrot.slane %v350_v48, 4 }
 0x12b   :  { %v392_v54 = vadd.f32 %v391_v53, %v350_v48  ;;  %v399_v55 = vrot.slane %v384_v52, 4 }
 0x12d   :  { %v393_v56 = vrot.slane %v392_v54, 2  ;;  %v400_v59 = vadd.f32 %v399_v55, %v384_v52 }
 0x12f   :  { %v394_v60 = vadd.f32 %v393_v56, %v392_v54  ;;  %v401_v61 = vrot.slane %v400_v59, 2 }
 0x131   :  { %v395_v62 = vrot.slane %v394_v60, 1  ;;  %v402_v1 = vadd.f32 %v401_v61, %v400_v59 }
 0x133   :  { %v396_v2 = vadd.f32 %v395_v62, %v394_v60  ;;  %v403_v3 = vrot.slane %v402_v1, 1 }
 0x135   :  { %v397_v4 = vmul.f32 0.0078125, %v396_v2  ;;  %v404_v5 = vadd.f32 %v403_v3, %v402_v1 }
 0x137   :  { %v405_v6 = vmul.f32 0.0078125, %v404_v5  ;;  %v406_v9 = vmul.f32 %v397_v4, %v397_v4 }
 0x139   :  { %v407_v10 = vsub.f32 %v405_v6, %v406_v9 }
 0x13b   :  { %v409_v11 = vadd.f32 1e-05, %v407_v10 }
 0x13d   :  { %744 = vrsqrt.f32 %v409_v11 }
 0x147   :  { %v745_v18 = vpop.eup %744 }
 0x148   :  { %v411_v19 = vmul.f32 %v745_v18, %v408_v16 }
 0x14a   :  { %v413_v21 = vmul.f32 %v411_v19, %v397_v4  ;;  %v435_v22 = vrot.slane %v411_v19, %v434_v17 }
 0x14c   :  { %v414_v23 = vsub.f32 %v412_v20, %v413_v21  ;;  %v437_v24 = vmul.f32 %v435_v22, %v859_v31  ;;  %v438_v25 = vmul.f32 %v435_v22, %v863_v35  ;;  %v439_v26 = vmul.f32 %v435_v22, %v873_v43 }
 0x14d   :  { %v440_v27 = vmul.f32 %v435_v22, %v880_v49  ;;  %v441_v28 = vmul.f32 %v435_v22, %v887_v57  ;;  %v442_v29 = vmul.f32 %v435_v22, %v894_v63  ;;  %v443_v30 = vmul.f32 %v435_v22, %v901_v7 }
 0x14e   :  { %v444_v33 = vmul.f32 %v435_v22, %v908_v13  ;;  %v445_v34 = vmul.f32 %v435_v22, %v861_v32  ;;  %v446_v37 = vmul.f32 %v435_v22, %v865_v36  ;;  %v447_v31 = vmul.f32 %v435_v22, %v875_v44 }
 0x14f   :  { %v448_v35 = vmul.f32 %v435_v22, %v882_v50  ;;  %v449_v43 = vmul.f32 %v435_v22, %v889_v58  ;;  %v450_v49 = vmul.f32 %v435_v22, %v896_v0  ;;  %v451_v57 = vmul.f32 %v435_v22, %v903_v8 }
 0x150   :  { %v452_v63 = vmul.f32 %v435_v22, %v910_v14  ;;  %v457_v38 = vrot.slane %v414_v23, %v434_v17 }
 0x152   :  { %v459_v7 = vadd.f32 %v457_v38, %v437_v24  ;;  %v460_v39 = vadd.f32 %v457_v38, %v438_v25  ;;  %v461_v13 = vadd.f32 %v457_v38, %v439_v26  ;;  %v462_v40 = vadd.f32 %v457_v38, %v440_v27 }
 0x153   :  { %v463_v32 = vadd.f32 %v457_v38, %v441_v28  ;;  %v464_v41 = vadd.f32 %v457_v38, %v442_v29  ;;  %v465_v36 = vadd.f32 %v457_v38, %v443_v30  ;;  %v466_v42 = vadd.f32 %v457_v38, %v444_v33 }
 0x154   :  { %v467_v44 = vadd.f32 %v457_v38, %v445_v34  ;;  %v468_v45 = vadd.f32 %v457_v38, %v446_v37  ;;  %v469_v50 = vadd.f32 %v457_v38, %v447_v31  ;;  %v470_v46 = vadd.f32 %v457_v38, %v448_v35 }
 0x155   :  { %v471_v58 = vadd.f32 %v457_v38, %v449_v43  ;;  %v472_v47 = vadd.f32 %v457_v38, %v450_v49  ;;  %v473_v0 = vadd.f32 %v457_v38, %v451_v57  ;;  %v474_v48 = vadd.f32 %v457_v38, %v452_v63 }
 0x156   :  { %v475_v8 = vmax.f32 %v459_v7, 0.0  ;;  %v476_v51 = vmax.f32 %v460_v39, 0.0  ;;  %v477_v14 = vmax.f32 %v461_v13, 0.0  ;;  %v478_v52 = vmax.f32 %v462_v40, 0.0 }
 0x157   :  { %v479_v53 = vmax.f32 %v463_v32, 0.0  ;;  %v480_v54 = vmax.f32 %v464_v41, 0.0  ;;  %v481_v55 = vmax.f32 %v465_v36, 0.0  ;;  %v482_v56 = vmax.f32 %v466_v42, 0.0 }
 0x158   :  { %v483_v59 = vmax.f32 %v467_v44, 0.0  ;;  %v484_v60 = vmax.f32 %v468_v45, 0.0  ;;  %v485_v61 = vmax.f32 %v469_v50, 0.0  ;;  %v486_v62 = vmax.f32 %v470_v46, 0.0 }
 0x159   :  { %v487_v1 = vmax.f32 %v471_v58, 0.0  ;;  %v488_v2 = vmax.f32 %v472_v47, 0.0  ;;  %v489_v3 = vmax.f32 %v473_v0, 0.0  ;;  %v490_v4 = vmax.f32 %v474_v48, 0.0 }
 0x15a   :  { %v644_v5 = vpack.c.bf16 %v476_v51, %v475_v8  ;;  %v649_v6 = vpack.c.bf16 %v478_v52, %v477_v14  ;;  %v654_v9 = vpack.c.bf16 %v480_v54, %v479_v53  ;;  %v659_v10 = vpack.c.bf16 %v482_v56, %v481_v55 }
 0x15b   :  { %v664_v11 = vpack.c.bf16 %v484_v60, %v483_v59  ;;  %v669_v12 = vpack.c.bf16 %v486_v62, %v485_v61  ;;  %v674_v15 = vpack.c.bf16 %v488_v2, %v487_v1  ;;  %v679_v16 = vpack.c.bf16 %v490_v4, %v489_v3 }
 0x15c   :  { %645 = vst [vmem:[%s989_s4] sm:$0xff] %v644_v5   ;;  %681 = vst [vmem:[%s989_s4 + $0x8] sm:$0xff] %v649_v6  }
 0x15d   :  { %682 = vst [vmem:[%s989_s4 + $0x10] sm:$0xff] %v654_v9   ;;  %683 = vst [vmem:[%s989_s4 + $0x18] sm:$0xff] %v659_v10  }
 0x15e   :  { %684 = vst [vmem:[%s989_s4 + $0x20] sm:$0xff] %v664_v11   ;;  %685 = vst [vmem:[%s989_s4 + $0x28] sm:$0xff] %v669_v12  }
 0x15f   :  { %686 = vst [vmem:[%s989_s4 + $0x30] sm:$0xff] %v674_v15   ;;  %687 = vst [vmem:[%s989_s4 + $0x38] sm:$0xff] %v679_v16  }

// kernel: animation_generator_forward.3
= control target key start
LH: loop header
LB: loop body
LE: loop exit
PB: predicated region body
PF: predicated region fallthrough
CT: control target
= control target key end

     0   :  { %vm375_vm0 = vcmask 523264   ;;  %s1012_s0 = inlined_call_operand.vmem [shape: bf16[32,576], index: 0, kind: input, shape index: {}]   ;;  %s1013_s1 = inlined_call_operand.vmem [shape: bf16[576,128], index: 1, kind: input, shape index: {}]   ;;  %s1014_s2 = inlined_call_operand.vmem [shape: f32[1,128], index: 2, kind: input, shape index: {}]   ;;  %s1015_s3 = inlined_call_operand.vmem [shape: f32[1,128], index: 3, kind: input, shape index: {}]   ;;  %s1016_s4 = inlined_call_operand.hbm [shape: f32[1,32,128], index: 4, kind: output, shape index: {}]  }
   0x1   :  { %v752_v0 = vld [vmem:[%s1013_s1 + $0x40] sm:$0xff]   ;;  %v756_v4 = vld [vmem:[%s1013_s1 + $0x48] sm:$0xff]   ;;  %v760_v8 = vld [vmem:[%s1013_s1 + $0x50] sm:$0xff]  }
   0x2   :  { %v753_v1 = vld [vmem:[%s1013_s1 + $0xc0] sm:$0xff]   ;;  %675 = vmatprep.subr.bf16.mxu0 %v752_v0  ;;  %v757_v5 = vld [vmem:[%s1013_s1 + $0xc8] sm:$0xff]   ;;  %v761_v9 = vld [vmem:[%s1013_s1 + $0xd0] sm:$0xff]  }
   0x3   :  { %v754_v2 = vld [vmem:[%s1013_s1] sm:$0xff]   ;;  %703 = vmatprep.subr.bf16.mxu1 %v753_v1  ;;  %v758_v6 = vld [vmem:[%s1013_s1 + $0x8] sm:$0xff]   ;;  %v762_v10 = vld [vmem:[%s1013_s1 + $0x10] sm:$0xff]  }
   0x4   :  { %v755_v3 = vld [vmem:[%s1013_s1 + $0x80] sm:$0xff]   ;;  %676 = vmatpush3.bf16.msra.mxu0 %v754_v2  ;;  %v759_v7 = vld [vmem:[%s1013_s1 + $0x88] sm:$0xff]   ;;  %v763_v11 = vld [vmem:[%s1013_s1 + $0x90] sm:$0xff]  }
   0x5   :  { %704 = vmatpush3.bf16.msra.mxu1 %v755_v3  ;;  %677 = vmatprep.subr.bf16.mxu0 %v756_v4  ;;  %v764_v12 = vld [vmem:[%s1013_s1 + $0x58] sm:$0xff]   ;;  %v768_v16 = vld [vmem:[%s1013_s1 + $0x60] sm:$0xff]   ;;  %v772_v20 = vld [vmem:[%s1013_s1 + $0x68] sm:$0xff]  }
   0x6   :  { %705 = vmatprep.subr.bf16.mxu1 %v757_v5  ;;  %v765_v13 = vld [vmem:[%s1013_s1 + $0xd8] sm:$0xff]   ;;  %v769_v17 = vld [vmem:[%s1013_s1 + $0xe0] sm:$0xff]   ;;  %v773_v21 = vld [vmem:[%s1013_s1 + $0xe8] sm:$0xff]  }
   0x7   :  { %v766_v14 = vld [vmem:[%s1013_s1 + $0x18] sm:$0xff]   ;;  %v770_v18 = vld [vmem:[%s1013_s1 + $0x20] sm:$0xff]   ;;  %v774_v22 = vld [vmem:[%s1013_s1 + $0x28] sm:$0xff]  }
   0x8   :  { %678 = vmatpush3.bf16.msra.mxu0 %v758_v6  ;;  %v767_v15 = vld [vmem:[%s1013_s1 + $0x98] sm:$0xff]   ;;  %v771_v19 = vld [vmem:[%s1013_s1 + $0xa0] sm:$0xff]   ;;  %v775_v23 = vld [vmem:[%s1013_s1 + $0xa8] sm:$0xff]  }
   0x9   :  { %706 = vmatpush3.bf16.msra.mxu1 %v759_v7  ;;  %679 = vmatprep.subr.bf16.mxu0 %v760_v8  ;;  %v776_v24 = vld [vmem:[%s1013_s1 + $0x70] sm:$0xff]   ;;  %v780_v28 = vld [vmem:[%s1013_s1 + $0x78] sm:$0xff]   ;;  %v789_v35 = vld [vmem:[%s1012_s0 + $0xc] ss:$20 sps:$4 sm:$0xff]  }
   0xa   :  { %707 = vmatprep.subr.bf16.mxu1 %v761_v9  ;;  %v777_v25 = vld [vmem:[%s1013_s1 + $0xf0] sm:$0xff]   ;;  %v781_v29 = vld [vmem:[%s1013_s1 + $0xf8] sm:$0xff]   ;;  %v790_v36 = vld [vmem:[%s1013_s1 + $0x100] sm:$0xff]   ;;  %463 = vmatprep.mubr.bf16.mxu1 %v789_v35 }
   0xb   :  { %v778_v26 = vld [vmem:[%s1013_s1 + $0x30] sm:$0xff]   ;;  %v782_v30 = vld [vmem:[%s1013_s1 + $0x38] sm:$0xff]   ;;  %v791_v37 = vld [vmem:[%s1013_s1 + $0x108] sm:$0xff]  }
   0xc   :  { %680 = vmatpush3.bf16.msra.mxu0 %v762_v10  ;;  %v779_v27 = vld [vmem:[%s1013_s1 + $0xb0] sm:$0xff]   ;;  %v783_v31 = vld [vmem:[%s1013_s1 + $0xb8] sm:$0xff]   ;;  %v792_v38 = vld [vmem:[%s1012_s0 + $0x2c] ss:$20 sps:$4 sm:$0xff]  }
   0xd   :  { %708 = vmatpush3.bf16.msra.mxu1 %v763_v11  ;;  %681 = vmatprep.subr.bf16.mxu0 %v764_v12  ;;  %v784_v32 = vld [vmem:[%s1012_s0] ss:$20 sps:$4 sm:$0xff]   ;;  %v786_v33 = vld [vmem:[%s1012_s0 + $0x4] ss:$20 sps:$4 sm:$0xff]   ;;  %v787_v34 = vld [vmem:[%s1012_s0 + $0x8] ss:$20 sps:$4 sm:$0xff]  }
   0xe   :  { %709 = vmatprep.subr.bf16.mxu1 %v765_v13  ;;  %414 = vmatprep.mubr.bf16.mxu0 %v786_v33  ;;  %v794_v39 = vld [vmem:[%s1012_s0 + $0x34] ss:$20 sps:$4 sm:$0xff]   ;;  %v797_v42 = vld [vmem:[%s1012_s0 + $0x30] ss:$20 sps:$4 sm:$0xff]   ;;  %v799_v44 = vld [vmem:[%s1013_s1 + $0x118] sm:$0xff]  }
   0xf   :  { %v796_v40 = vld [vmem:[%s1012_s0 + $0x28] ss:$20 sps:$4 sm:$0xff]   ;;  %v798_v41 = vld [vmem:[%s1013_s1 + $0x110] sm:$0xff]  }
  0x10   :  { %682 = vmatpush3.bf16.msra.mxu0 %v766_v14  ;;  %v800_v43 = vld [vmem:[%s1012_s0 + $0x10] ss:$20 sps:$4 sm:$0xff]  }
  0x11   :  { %710 = vmatpush3.bf16.msra.mxu1 %v767_v15  ;;  %683 = vmatprep.subr.bf16.mxu0 %v768_v16 }
  0x12   :  { %711 = vmatprep.subr.bf16.mxu1 %v769_v17 }
  0x14   :  { %684 = vmatpush3.bf16.msra.mxu0 %v770_v18 }
  0x15   :  { %712 = vmatpush3.bf16.msra.mxu1 %v771_v19  ;;  %685 = vmatprep.subr.bf16.mxu0 %v772_v20 }
  0x16   :  { %713 = vmatprep.subr.bf16.mxu1 %v773_v21 }
  0x18   :  { %686 = vmatpush3.bf16.msra.mxu0 %v774_v22 }
  0x19   :  { %714 = vmatpush3.bf16.msra.mxu1 %v775_v23  ;;  %687 = vmatprep.subr.bf16.mxu0 %v776_v24 }
  0x1a   :  { %715 = vmatprep.subr.bf16.mxu1 %v777_v25 }
  0x1c   :  { %688 = vmatpush3.bf16.msra.mxu0 %v778_v26 }
  0x1d   :  { %716 = vmatpush3.bf16.msra.mxu1 %v779_v27  ;;  %689 = vmatprep.subr.bf16.mxu0 %v780_v28 }
  0x1e   :  { %717 = vmatprep.subr.bf16.mxu1 %v781_v29 }
  0x20   :  { %690 = vmatpush3.bf16.msra.mxu0 %v782_v30 }
  0x21   :  { %718 = vmatpush3.bf16.msra.mxu1 %v783_v31  ;;  %737 = vmatprep.subr.bf16.mxu0 %v790_v36 }
  0x23   :  { %415 = vmatmul.mubr.bf16.vlgmr.msra.gmra.mrb[0].mxu0 %v784_v32 }
  0x24   :  { %464 = vmatmul.mubr.bf16.vlgmr.msra.gmra.mrb[0].mxu1 %v787_v34  ;;  %738 = vmatpush3.bf16.msra.mxu0 %v790_v36 }
  0x25   :  { %739 = vmatprep.subr.bf16.mxu0 %v791_v37  ;;  %422 = vmatprep.mubr.bf16.mxu0 %v792_v38 }
  0x26   :  { %471 = vmatprep.mubr.bf16.mxu1 %v794_v39 }
  0x28   :  { %740 = vmatpush3.bf16.msra.mxu0 %v791_v37 }
  0x29   :  { %741 = vmatprep.subr.bf16.mxu0 %v798_v41 }
  0x2a   :  { %9 = vsyncpa [#allocation6], 0  ;;  %v801_v45 = vld [vmem:[%s1012_s0 + $0x38] ss:$20 sps:$4 sm:$0xff]   ;;  %s828_s5 = smov [#allocation5]  }
  0x2b   :  { %423 = vmatmul.mubr.bf16.gmra.mrb[4].mxu0 %v796_v40  ;;  %s616_s6 = sshll.u32 %s828_s5, 4  ;;  %s617_s6 = int_to_ptr.vmem [resolvable:$true] %s616_s6 }
  0x2c   :  { %472 = vmatmul.mubr.bf16.gmra.mrb[4].mxu1 %v797_v42  ;;  %745 = vmatprep.mubr.msk.bf16.mxu0 %vm375_vm0, %v800_v43  ;;  %p809_p1 = scmp.lt.s32.totalorder %s617_s6, %s617_s6 }
  0x2d   :  { %742 = vmatpush3.bf16.msra.mxu0 %v798_v41 }
  0x2e   :  { %743 = vmatprep.subr.bf16.mxu0 %v799_v44 }
  0x31   :  { %744 = vmatpush3.bf16.msra.mxu0 %v799_v44 }
  0x34   :  { %746 = vmatmul.mubr.msk.bf16.vlgmr.msra.gmra.mrb[8].mxu0 %vm375_vm0, %v801_v45  ;;  %v584_v45 = vlaneseq }
  0xf6   :  { %v691_v46 = vpop.f32.mrb[0].mxu0 }
  0xf7   :  { %v719_v47 = vpop.f32.mrb[0].mxu1  ;;  %v692_v48 = vpop.f32.mrb[1].mxu0 }
  0xf8   :  { %v693_v49 = vadd.f32 %v692_v48, %v691_v46  ;;  %v720_v50 = vpop.f32.mrb[1].mxu1  ;;  %v694_v51 = vpop.f32.mrb[2].mxu0  ;;  %v585_v46 = vshrl.u32 %v584_v45, 7 }
  0xf9   :  { %v721_v52 = vadd.f32 %v720_v50, %v719_v47  ;;  %v722_v53 = vpop.f32.mrb[2].mxu1  ;;  %v695_v54 = vpop.f32.mrb[3].mxu0  ;;  %v572_v47 = vld [vmem:[%s1014_s2] sm:$0x1]  ;;  %s804_s2 = scalar_lea.vmem %s617_s6, 512 }
  0xfa   :  { %v696_v55 = vadd.f32 %v695_v54, %v694_v51  ;;  %v723_v56 = vpop.f32.mrb[3].mxu1  ;;  %v586_v48 = vsub.s32 0, %v585_v46  ;;  %v576_v51 = vld [vmem:[%s1015_s3] sm:$0x1]  ;;  %p805_p0 = scmp.ne.s32.totalorder %s617_s6, %s804_s2  ;;  %p810_p2 = scmp.lt.s32.totalorder %s804_s2, %s804_s2 }
  0xfb   :  { %v724_v57 = vadd.f32 %v723_v56, %v722_v53  ;;  %v466_v58 = vadd.f32 %v721_v52, %v693_v49 }
  0xfc   :  { %p811_p3 = por %p810_p2, %p809_p1 }
  0xfd   :  { %v469_v59 = vadd.f32 %v724_v57, %v696_v55 }
  0xfe   :  { %v697_v60 = vpop.f32.mrb[4].mxu0  ;;  %p812_p4 = pnand %p811_p3, %p805_p0 }
  0xff   :  { %v725_v61 = vpop.f32.mrb[4].mxu1  ;;  %v698_v62 = vpop.f32.mrb[5].mxu0 }
 0x100   :  { %v699_v63 = vadd.f32 %v698_v62, %v697_v60  ;;  %v726_v0 = vpop.f32.mrb[5].mxu1  ;;  %v700_v1 = vpop.f32.mrb[6].mxu0 }
 0x101   :  { %v727_v2 = vadd.f32 %v726_v0, %v725_v61  ;;  %v728_v3 = vpop.f32.mrb[6].mxu1  ;;  %v701_v4 = vpop.f32.mrb[7].mxu0 }
 0x102   :  { %v702_v5 = vadd.f32 %v701_v4, %v700_v1  ;;  %v729_v6 = vpop.f32.mrb[7].mxu1 }
 0x103   :  { %v730_v7 = vadd.f32 %v729_v6, %v728_v3  ;;  %v474_v8 = vadd.f32 %v727_v2, %v699_v63 }
 0x105   :  { %v477_v9 = vadd.f32 %v730_v7, %v702_v5 }
 0x107   :  { %v747_v10 = vpop.f32.mrb[8].mxu0 }
 0x108   :  { %v523_v11 = vadd.f32 %v747_v10, %v474_v8  ;;  %v514_v12 = vpop.f32.mrb[9].mxu0 }
 0x109   :  { %v515_v13 = vadd.f32 %v514_v12, %v466_v58  ;;  %v748_v14 = vpop.f32.mrb[10].mxu0 }
 0x10a   :  { %v526_v15 = vadd.f32 %v748_v14, %v477_v9  ;;  %v517_v16 = vpop.f32.mrb[11].mxu0  ;;  %v544_v21 = vmul.f32 %v523_v11, %v523_v11 }
 0x10b   :  { %v518_v17 = vadd.f32 %v517_v16, %v469_v59  ;;  %v542_v18 = vmul.f32 %v515_v13, %v515_v13 }
 0x10c   :  { %v545_v24 = vmul.f32 %v526_v15, %v526_v15 }
 0x10d   :  { %v536_v19 = vadd.f32 %v518_v17, %v515_v13  ;;  %v543_v20 = vmul.f32 %v518_v17, %v518_v17 }
 0x10f   :  { %v537_v22 = vadd.f32 %v536_v19, %v523_v11  ;;  %v546_v23 = vadd.f32 %v543_v20, %v542_v18 }
 0x111   :  { %v538_v25 = vadd.f32 %v537_v22, %v526_v15  ;;  %v547_v26 = vadd.f32 %v546_v23, %v544_v21 }
 0x113   :  { %v548_v27 = vadd.f32 %v547_v26, %v545_v24  ;;  %v555_v28 = vrot.slane %v538_v25, 4 }
 0x115   :  { %v556_v29 = vadd.f32 %v555_v28, %v538_v25  ;;  %v563_v30 = vrot.slane %v548_v27, 4 }
 0x117   :  { %v557_v31 = vrot.slane %v556_v29, 2  ;;  %v564_v32 = vadd.f32 %v563_v30, %v548_v27 }
 0x119   :  { %v558_v33 = vadd.f32 %v557_v31, %v556_v29  ;;  %v565_v34 = vrot.slane %v564_v32, 2 }
 0x11b   :  { %v559_v35 = vrot.slane %v558_v33, 1  ;;  %v566_v36 = vadd.f32 %v565_v34, %v564_v32 }
 0x11d   :  { %v560_v37 = vadd.f32 %v559_v35, %v558_v33  ;;  %v567_v38 = vrot.slane %v566_v36, 1 }
 0x11f   :  { %v561_v39 = vmul.f32 0.03125, %v560_v37  ;;  %v568_v40 = vadd.f32 %v567_v38, %v566_v36 }
 0x121   :  { %v569_v41 = vmul.f32 0.03125, %v568_v40  ;;  %v570_v42 = vmul.f32 %v561_v39, %v561_v39 }
 0x123   :  { %v571_v43 = vsub.f32 %v569_v41, %v570_v42 }
 0x125   :  { %v573_v44 = vadd.f32 1e-05, %v571_v43 }
 0x127   :  { %802 = vrsqrt.f32 %v573_v44 }
 0x131   :  { %v803_v49 = vpop.eup %802 }
 0x132   :  { %v575_v50 = vmul.f32 %v803_v49, %v572_v47 }
 0x134   :  { %v577_v52 = vmul.f32 %v575_v50, %v561_v39  ;;  %v587_v53 = vrot.slane %v575_v50, %v586_v48 }
 0x136   :  { %v578_v54 = vsub.f32 %v576_v51, %v577_v52  ;;  %v590_v55 = vmul.f32 %v587_v53, %v518_v17  ;;  %v589_v56 = vmul.f32 %v587_v53, %v515_v13  ;;  %v591_v57 = vmul.f32 %v587_v53, %v523_v11 }
 0x137   :  { %v592_v58 = vmul.f32 %v587_v53, %v526_v15 }
 0x138   :  { %v597_v59 = vrot.slane %v578_v54, %v586_v48 }
 0x13a   :  { %v600_v60 = vadd.f32 %v597_v59, %v590_v55  ;;  %v599_v61 = vadd.f32 %v597_v59, %v589_v56  ;;  %v601_v62 = vadd.f32 %v597_v59, %v591_v57  ;;  %v602_v63 = vadd.f32 %v597_v59, %v592_v58 }
 0x13c   :  { %v604_v0 = vmax.f32 %v600_v60, 0.0  ;;  %v603_v1 = vmax.f32 %v599_v61, 0.0  ;;  %v605_v2 = vmax.f32 %v601_v62, 0.0  ;;  %v606_v3 = vmax.f32 %v602_v63, 0.0 }
 0x13e   :  { %608 = vst [vmem:[#allocation5 + $0x8] sm:$0xff] %v604_v0  ;;  %607 = vst [vmem:[#allocation5] sm:$0xff] %v603_v1 }
 0x13f   :  { %609 = vst [vmem:[#allocation5 + $0x10] sm:$0xff] %v605_v2  ;;  %610 = vst [vmem:[#allocation5 + $0x18] sm:$0xff] %v606_v3 }
 0x140   :  { %815 = shalt.err (!%p812_p4)
}
 0x141   :  { %s816_s8 = scalar_lea.hbm %s1016_s4, 512 }
 0x142   :  { %p817_p5 = scmp.ne.s32.totalorder %s1016_s4, %s816_s8  ;;  %p820_p6 = scmp.lt.u32.totalorder %s816_s8, %s1016_s4 }
 0x144   :  { %p822_p7 = pnand %p820_p6, %p817_p5 }
 0x146   :  { %825 = shalt.err (!%p822_p7)
}
 0x147   :  { %s829_s13 = smov 128   ;;  %s830_s14 = smov 8  }
 0x148   :  { %622 = dma.vmem_to_hbm [thread:$0]  %s617_s6, 512, %s1016_s4, [#allocation6], %s829_s13, %s829_s13, %s830_s14  }
 0x149   :  { %826 = dma.done.wait [#allocation6], 512  }
 0x14a   :  { %827 = vsyncadd [#allocation6], 4294966784 }
 0x14b   :  { %626 = vsyncpa [#allocation6], 1 }

</bundles_post_ra>
